<compile_context>
chip_gen: v6e
topology: v6e:2x2x1
jax: 0.10.0
libtpu: 0.0.40
codegen_flags: <defaults>
</compile_context>

<pallas_src>
import functools
import math

import jax
import jax.numpy as jnp
from jax.experimental import pallas as pl
from jax.experimental.pallas import tpu as pltpu


_LANE = 128                               # lane width of a vreg (last-dim tiling)
_MIN_PALLAS_BYTES = 4 * 1024 * 1024       # below this, fused XLA transpose wins
_MAX_BLOCK_BYTES = 10 * 1024 * 1024       # decline Pallas if minimal aligned block is bigger
_MIN_BLOCK_BYTES_FOR_SPLIT = 256 * 1024   # don't shrink blocks below this just to add grid steps


def _round_up(x: int, m: int) -> int:
    return ((x + m - 1) // m) * m


def _lcm(a: int, b: int) -> int:
    return a * b // math.gcd(a, b)


def _sublane_align(dtype) -> int:
    """Second-to-last block-dim tiling: 8 (f32), 16 (bf16), 32 (int8/fp8)."""
    return max(8, 32 // jnp.dtype(dtype).itemsize)


def _block_budget_bytes() -> int:
    """Target padded bytes per (in or out) block, re-derived per TPU generation."""
    try:
        kind = jax.devices()[0].device_kind.lower()
    except Exception:  # pragma: no cover - device query should not be fatal
        kind = ""
    if "v5" in kind:
        return 4 * 1024 * 1024   # v5e: 16 MiB scoped default, ~0.8 TB/s HBM
    if "v6" in kind:
        return 8 * 1024 * 1024   # v6e: plenty of VMEM, amortize ~0.35us/step overhead
    return 6 * 1024 * 1024       # v7x (64 MiB physical VMEM) and unknown chips


def _pick_tile(full: int, cap: int, align: int) -> int:
    """Largest legal tile <= cap: either the full extent or an `align` multiple."""
    if full <= cap:
        return full              # full extent is always a legal block dim
    return max(align, (cap // align) * align)


def _choose_tiles(C, H, W, align_c, align_h, budget_elems):
    """Budget-driven (tc, th): balanced first guess, then each dim fills the leftover."""
    tgt = max(1, math.isqrt(max(1, budget_elems // max(1, W))))
    th = _pick_tile(H, max(align_h, (tgt // align_h) * align_h), align_h)
    tc = _pick_tile(C, max(align_c, budget_elems // max(1, th * W)), align_c)
    th = _pick_tile(H, max(align_h, budget_elems // max(1, tc * W)), align_h)
    return tc, th


def _grow_grid_steps(B, C, H, W, tc, th, align_c, align_h, itemsize, min_steps=4):
    """Halve tiles (keeping alignment) until the grid has enough steps for 2 TCs."""
    min_elems = _MIN_BLOCK_BYTES_FOR_SPLIT // itemsize

    def nsteps(a, b):
        return B * pl.cdiv(C, a) * pl.cdiv(H, b)

    while nsteps(tc, th) < min_steps:
        halved = False
        for dim in (("c", "h") if tc >= th else ("h", "c")):
            cur, align = (tc, align_c) if dim == "c" else (th, align_h)
            other = th if dim == "c" else tc
            new = max(align, ((cur // 2) // align) * align)
            if new < cur and new * other * W >= min_elems:
                if dim == "c":
                    tc = new
                else:
                    th = new
                halved = True
                break
        if not halved:
            break
    return tc, th


# ---------------------------------------------------------------------------
# Kernels
# ---------------------------------------------------------------------------

def _swap12_block_kernel(x_ref, o_ref):
    # x_ref: (1, tc, th, W)  ->  o_ref: (1, th, tc, W).  The DMAs (via the
    # index_maps) already routed this tile to its transposed block position;
    # only the aligned intra-tile swap happens on-chip (XLU work that overlaps
    # with the DMA stream in this memory-bound kernel).
    o_ref[...] = jnp.swapaxes(x_ref[...], 1, 2)


def _swap12_lane_dense_kernel(x_ref, o_ref, *, tc, th, w):
    # Lane-dense blocks: x_ref (1, tc, th*w), o_ref (1, th, tc*w).
    # Split the input lanes into (th, w), swap tile axes, merge (tc, w) back into
    # dense lanes so the output vector stores are full-width (unmasked).
    x = x_ref[...].reshape(1, tc, th, w)
    y = jnp.swapaxes(x, 1, 2)                  # (1, th, tc, w)
    o_ref[...] = y.reshape(1, th, tc * w)


# ---------------------------------------------------------------------------
# pallas_call wrappers
# ---------------------------------------------------------------------------

def _transpose_c_h_4d(x4, tc, th, vmem_limit):
    """(B, C, H, W) -> (B, H, C, W) with 4-D blocks (used when W % 128 == 0)."""
    B, C, H, W = x4.shape
    grid = (B, pl.cdiv(H, th), pl.cdiv(C, tc))
    return pl.pallas_call(
        _swap12_block_kernel,
        out_shape=jax.ShapeDtypeStruct((B, H, C, W), x4.dtype),
        grid=grid,
        in_specs=[pl.BlockSpec((1, tc, th, W), lambda b, h, c: (b, c, h, 0))],
        out_specs=pl.BlockSpec((1, th, tc, W), lambda b, h, c: (b, h, c, 0)),
        compiler_params=pltpu.CompilerParams(
            dimension_semantics=("parallel", "parallel", "parallel"),
            vmem_limit_bytes=vmem_limit,
        ),
    )(x4)


def _transpose_c_h_lane_dense(x4, tc, th, vmem_limit):
    """(B, C, H, W) -> (B, H, C, W) via lane-dense merged views (W % 128 != 0)."""
    B, C, H, W = x4.shape
    x3 = x4.reshape(B, C, H * W)    # free wrapper-side view: contiguous reshape
    grid = (B, pl.cdiv(H, th), pl.cdiv(C, tc))
    kern = functools.partial(_swap12_lane_dense_kernel, tc=tc, th=th, w=W)
    y3 = pl.pallas_call(
        kern,
        out_shape=jax.ShapeDtypeStruct((B, H, C * W), x4.dtype),
        grid=grid,
        in_specs=[pl.BlockSpec((1, tc, th * W), lambda b, h, c: (b, c, h))],
        out_specs=pl.BlockSpec((1, th, tc * W), lambda b, h, c: (b, h, c)),
        compiler_params=pltpu.CompilerParams(
            dimension_semantics=("parallel", "parallel", "parallel"),
            vmem_limit_bytes=vmem_limit,
        ),
    )(x3)
    return y3.reshape(B, H, C, W)   # free wrapper-side view back to 4-D


def _transpose_c_h(x4):
    """(B, C, H, W) -> (B, H, C, W).  Returns None if the shape is unsuited."""
    B, C, H, W = x4.shape
    itemsize = jnp.dtype(x4.dtype).itemsize
    sub = _sublane_align(x4.dtype)
    budget_elems = max(1, _block_budget_bytes() // itemsize)

    lane_dense = (W % _LANE) != 0
    if lane_dense:
        # tc*W and th*W must be multiples of 128 (lanes) and tc/th multiples of
        # the sublane alignment — or equal to the full extent.
        lane_factor = _LANE // math.gcd(W, _LANE)
        align_c = align_h = _lcm(sub, lane_factor)
    else:
        align_c = align_h = sub

    tc, th = _choose_tiles(C, H, W, align_c, align_h, budget_elems)
    tc, th = _grow_grid_steps(B, C, H, W, tc, th, align_c, align_h, itemsize)

    # Padding-aware footprint of the bigger of the in/out blocks.
    if lane_dense:
        blk_elems = max(_round_up(tc, sub) * _round_up(th * W, _LANE),
                        _round_up(th, sub) * _round_up(tc * W, _LANE))
    else:
        blk_elems = max(tc * _round_up(th, sub), th * _round_up(tc, sub)) * W
    blk_bytes = blk_elems * itemsize
    if blk_bytes > _MAX_BLOCK_BYTES:
        # TODO(synk): very wide W (or pathologically unaligned C/H) would need an
        # extra W-tiling level; fall back to XLA instead of risking a VMEM OOM.
        return None

    # in + out, each double-buffered, plus headroom for Pallas-internal scratch.
    vmem_limit = int(min(56 << 20, max(32 << 20, 4 * blk_bytes + (16 << 20))))

    if lane_dense:
        try:
            return _transpose_c_h_lane_dense(x4, tc, th, vmem_limit)
        except Exception:
            # TODO(synk): if the in-kernel lane split/merge fails to lower on some
            # Mosaic version, fall back to the proven 4-D block kernel (correct,
            # just with masked W-wide stores and 128/W VMEM padding).
            w_pad = _round_up(W, _LANE)
            tc, th = _choose_tiles(C, H, w_pad, sub, sub, budget_elems)
            tc, th = _grow_grid_steps(B, C, H, w_pad, tc, th, sub, sub, itemsize)
            blk_bytes = max(tc * _round_up(th, sub),
                            th * _round_up(tc, sub)) * w_pad * itemsize
            vmem_limit = int(min(56 << 20, max(32 << 20, 4 * blk_bytes + (16 << 20))))
            return _transpose_c_h_4d(x4, tc, th, vmem_limit)
    return _transpose_c_h_4d(x4, tc, th, vmem_limit)


# ---------------------------------------------------------------------------
# Public wrapper (same semantics as torch.transpose / the Transpose module)
# ---------------------------------------------------------------------------

def pallas_transpose(x: jnp.ndarray, dim0: int, dim1: int,
                     *, min_pallas_bytes: int = _MIN_PALLAS_BYTES) -> jnp.ndarray:
    """Swap axes dim0 and dim1 of x (same semantics as torch.transpose)."""
    ndim = x.ndim
    d0, d1 = sorted((dim0 % ndim, dim1 % ndim))
    if d0 == d1:
        return x

    # Tiny tensors: kernel launch + per-step overhead dominates; a fused XLA
    # transpose is strictly faster below roofline scale.
    total_bytes = x.size * jnp.dtype(x.dtype).itemsize
    if total_bytes >= min_pallas_bytes and ndim >= 3 and (d0, d1) == (ndim - 3, ndim - 2):
        # Pallas fast path: swap of the two axes directly above the lane (last)
        # axis, with any number of leading "batch" axes (covers Transpose(1, 2)
        # on NCHW inputs).  Leading axes collapse into a single grid axis.
        lead = x.shape[:ndim - 3]
        C, H, W = x.shape[ndim - 3], x.shape[ndim - 2], x.shape[ndim - 1]
        B = 1
        for s in lead:
            B *= s
        y4 = _transpose_c_h(x.reshape((B, C, H, W)))
        if y4 is not None:
            return y4.reshape(lead + (H, C, W))

    # TODO(synk): swaps touching the batch or lane (last) axis, tiny tensors and
    # shapes whose minimal aligned block would not fit VMEM fall back to XLA.
    return jnp.swapaxes(x, dim0, dim1)


if __name__ == "__main__":
    k1, k2 = jax.random.split(jax.random.PRNGKey(0))

    # Module-spec shape: NCHW batch=2, channels=4, spatial=16x16; Transpose(1, 2).
    x = jax.random.normal(k1, (2, 4, 16, 16), dtype=jnp.float32)
    dim0, dim1 = 1, 2

    # Default path (honors the small-tensor XLA fallback) — module semantics.
    out_default = jax.block_until_ready(pallas_transpose(x, dim0, dim1))

    # Force the Pallas path even at this tiny size so the kernel is exercised on
    # TPU: W=16 is not a multiple of 128 -> lane-dense (merged-view) kernel.
    out_pallas = jax.block_until_ready(
        pallas_transpose(x, dim0, dim1, min_pallas_bytes=0))

    # Also exercise the lane-aligned 4-D block kernel (W = 128), still small.
    x2 = jax.random.normal(k2, (2, 16, 32, 128), dtype=jnp.float32)
    out_pallas2 = jax.block_until_ready(
        pallas_transpose(x2, 1, 2, min_pallas_bytes=0))

    # Bit-exact reference checks against jnp.swapaxes (== torch.transpose).
    ref = jnp.swapaxes(x, dim0, dim1)
    ref2 = jnp.swapaxes(x2, 1, 2)
    assert out_default.shape == ref.shape, (out_default.shape, ref.shape)
    assert jnp.array_equal(out_default, ref), "default path mismatch"
    assert out_pallas.shape == ref.shape, (out_pallas.shape, ref.shape)
    assert jnp.array_equal(out_pallas, ref), "lane-dense Pallas path mismatch"
    assert out_pallas2.shape == ref2.shape, (out_pallas2.shape, ref2.shape)
    assert jnp.array_equal(out_pallas2, ref2), "4-D Pallas path mismatch"

    print("KERNEL_OK")
</pallas_src>

<mosaic_0001>
module attributes {stable_mosaic.version = 11 : i64} {
  func.func @_swap12_lane_dense_kernel(%arg0: i32, %arg1: i32, %arg2: i32, %arg3: memref<1x4x256xf32, #tpu.memory_space<vmem>>, %arg4: memref<1x16x64xf32, #tpu.memory_space<vmem>>) attributes {dimension_semantics = [#tpu.dimension_semantics<parallel>, #tpu.dimension_semantics<parallel>, #tpu.dimension_semantics<parallel>], iteration_bounds = array<i64: 2, 1, 1>, scalar_prefetch = 0 : i64, scratch_operands = 0 : i64, tpu.core_type = #tpu.core_type<tc>, window_params = [{transform_indices = @transform_0, window_bounds = array<i64: 1, 4, 256>}, {transform_indices = @transform_1, window_bounds = array<i64: 1, 16, 64>}]} {
    %c0 = arith.constant 0 : index
    %c0_0 = arith.constant 0 : index
    %c0_1 = arith.constant 0 : index
    %0 = vector.load %arg3[%c0, %c0_0, %c0_1] : memref<1x4x256xf32, #tpu.memory_space<vmem>>, vector<1x4x256xf32>
    %1 = vector.shape_cast %0 : vector<1x4x256xf32> to vector<1x4x16x16xf32>
    %2 = tpu.transpose %1, [0, 2, 1, 3] : vector<1x4x16x16xf32> -> vector<1x16x4x16xf32>
    %3 = vector.shape_cast %2 : vector<1x16x4x16xf32> to vector<1x16x64xf32>
    %c0_2 = arith.constant 0 : index
    %c0_3 = arith.constant 0 : index
    %c0_4 = arith.constant 0 : index
    %4 = vector.load %arg4[%c0_2, %c0_3, %c0_4] : memref<1x16x64xf32, #tpu.memory_space<vmem>>, vector<1x16x64xf32>
    tpu.vector_store %arg4[%c0_2, %c0_3, %c0_4], %3 {strides = array<i32>} : memref<1x16x64xf32, #tpu.memory_space<vmem>>, vector<1x16x64xf32>,
    return
  }
  func.func @transform_0(%arg0: i32, %arg1: i32, %arg2: i32) -> (i32, i32, i32) {
    %c0_i32 = arith.constant 0 : i32
    return %arg0, %arg2, %arg1 : i32, i32, i32
  }
  func.func @transform_1(%arg0: i32, %arg1: i32, %arg2: i32) -> (i32, i32, i32) {
    %c0_i32 = arith.constant 0 : i32
    return %arg0, %arg1, %arg2 : i32, i32, i32
  }
}

module attributes {stable_mosaic.version = 11 : i64} {
  func.func @_swap12_block_kernel(%arg0: i32, %arg1: i32, %arg2: i32, %arg3: memref<1x4x16x16xf32, #tpu.memory_space<vmem>>, %arg4: memref<1x16x4x16xf32, #tpu.memory_space<vmem>>) attributes {dimension_semantics = [#tpu.dimension_semantics<parallel>, #tpu.dimension_semantics<parallel>, #tpu.dimension_semantics<parallel>], iteration_bounds = array<i64: 2, 1, 1>, scalar_prefetch = 0 : i64, scratch_operands = 0 : i64, tpu.core_type = #tpu.core_type<tc>, window_params = [{transform_indices = @transform_0, window_bounds = array<i64: 1, 4, 16, 16>}, {transform_indices = @transform_1, window_bounds = array<i64: 1, 16, 4, 16>}]} {
    %c0 = arith.constant 0 : index
    %c0_0 = arith.constant 0 : index
    %c0_1 = arith.constant 0 : index
    %c0_2 = arith.constant 0 : index
    %0 = vector.load %arg3[%c0, %c0_0, %c0_1, %c0_2] : memref<1x4x16x16xf32, #tpu.memory_space<vmem>>, vector<1x4x16x16xf32>
    %1 = tpu.transpose %0, [0, 2, 1, 3] : vector<1x4x16x16xf32> -> vector<1x16x4x16xf32>
    %c0_3 = arith.constant 0 : index
    %c0_4 = arith.constant 0 : index
    %c0_5 = arith.constant 0 : index
    %c0_6 = arith.constant 0 : index
    %2 = vector.load %arg4[%c0_3, %c0_4, %c0_5, %c0_6] : memref<1x16x4x16xf32, #tpu.memory_space<vmem>>, vector<1x16x4x16xf32>
    tpu.vector_store %arg4[%c0_3, %c0_4, %c0_5, %c0_6], %1 {strides = array<i32>} : memref<1x16x4x16xf32, #tpu.memory_space<vmem>>, vector<1x16x4x16xf32>,
    return
  }
  func.func @transform_0(%arg0: i32, %arg1: i32, %arg2: i32) -> (i32, i32, i32, i32) {
    %c0_i32 = arith.constant 0 : i32
    %c0_i32_0 = arith.constant 0 : i32
    return %arg0, %arg2, %arg1, %c0_i32 : i32, i32, i32, i32
  }
  func.func @transform_1(%arg0: i32, %arg1: i32, %arg2: i32) -> (i32, i32, i32, i32) {
    %c0_i32 = arith.constant 0 : i32
    %c0_i32_0 = arith.constant 0 : i32
    return %arg0, %arg1, %arg2, %c0_i32 : i32, i32, i32, i32
  }
}

</mosaic_0001>

<bundles_post_ra>
// kernel: tpu_custom_call.1
= control target key start
LH: loop header
LB: loop body
LE: loop exit
PB: predicated region body
PF: predicated region fallthrough
CT: control target
= control target key end

     0   :  { %6 = vsyncpa [#allocation3], 0  ;;  %s1224_s0 = inlined_call_operand.hbm [shape: f32[2,4,256], index: 0, kind: input, shape index: {}]   ;;  %s1225_s1 = inlined_call_operand.hbm [shape: f32[2,16,64], index: 1, kind: output, shape index: {}]  }
   0x1   :  { %8 = vsyncpa [#allocation3 + $0x1], 0 }
   0x2   :  { %9 = vsyncpa [#allocation4], 0 }
   0x3   :  { %11 = vsyncpa [#allocation4 + $0x1], 0  ;;  %s1014_s6 = smov 0   ;;  %s1016_s7 = smov 0  }
   0x4   :  { %s1018_s8 = smov 0   ;;  %s1020_s9 = smov 0  }
   0x5   :  { %s1022_s10 = smov 0   ;;  %s1024_s11 = smov 0  }
   0x6 LB: > { %s779_s12 = sadd.s32 4294967295, %s989_s11   ;;  %s780_s13 = sadd.s32 4294967294, %s989_s11   ;;  %s989_s11 = sphi %s1024_s11, %s17_s11   ;;  %s985_s10 = sphi %s1022_s10, %s1237_s10   ;;  %s981_s9 = sphi %s1020_s9, %s1236_s9   ;;  %s977_s8 = sphi %s1018_s8, %s1235_s8   ;;  %s973_s7 = sphi %s1016_s7, %s1234_s7   ;;  %s969_s6 = sphi %s1014_s6, %s1233_s6  }
   0x7   : > { %s36_s14 = sadd.s32 1, %s985_s10  ;;  %s47_s15 = sadd.s32 1, %s977_s8 }
   0x8   : > { %p38_p0 = scmp.ge.s32.totalorder %s36_s14, 2  ;;  %p54_p1 = scmp.ne.s32.totalorder %s977_s8, %s973_s7 }
   0x9   : > { %p55_p2 = scmp.eq.s32.totalorder %s989_s11, 0  ;;  %p60_p3 = scmp.ne.s32.totalorder %s973_s7, %s969_s6 }
   0xa   : > { %s1239_s14 = smov (%p38_p0, %s36_s14), 0  ;;  %p61_p5 = scmp.eq.s32.totalorder %s779_s12, 0 }
   0xb   : > { %p1055_p4 = por %p55_p2, %p54_p1  ;;  %s40_s17 = ssub.s32 %s985_s10, %s1239_s14 }
   0xc   : > { %p88_p6 = scmp.eq.s32.totalorder %s779_s12, 1  ;;  %p45_p7 = scmp.eq.s32.totalorder %s40_s17, 0 }
   0xd   : > { %p1061_p8 = por %p61_p5, %p60_p3  ;;  %p94_p10 = scmp.eq.s32.totalorder %s780_s13, 1 }
   0xe   : > { %p1065_p9 = por %p88_p6, %p54_p1  ;;  %p820_p13 = scmp.lt.s32.totalorder %s989_s11, 2 }
   0xf   : > { %s1070_s20 = scalar_select %p45_p7, %s977_s8, %s47_s15  }
  0x10   : > { %p1072_p11 = por %p94_p10, %p60_p3  ;;  %s114_s22 = sand.u32 1, %s977_s8  }
  0x11   : > { %s783_s23 = sshll.u32 %s114_s22, 3  ;;  %s806_s24 = sshll.u32 %s985_s10, 7 }
  0x12   : > { %s1229_s21 = scalar_select %p1072_p11, 1, 0 }
  0x13   : > { %s128_s27 = scalar_lea.hbm %s1224_s0, %s806_s24  ;;  %s118_s28 = scalar_lea.vmem [#allocation2], %s783_s23 }
  0x14   : > { %s130_s29 = sshll.u32 %s118_s28, 4  ;;  %p1085_p0 = pnand %p820_p13, %p1055_p4  ;;  %s131_s29 = int_to_ptr.vmem [resolvable:$true] %s130_s29 }
  0x15   : > { %p786_p1 = scmp.ge.s32.totalorder %s989_s11, 1  ;;  %p135_p2 = scmp.lt.s32.totalorder %s989_s11, 3 }
  0x16   : > { %s115_s2 = scalar_lea.sflag [#allocation3], %s114_s22  ;;  %p883_p3 = pneg %p1085_p0 }
  0x17   : > { %s894_s3 = scalar_lea.vmem %s131_s29, 128  ;;  %s991_s4 = smov [#allocation2]  }
  0x18   : > { %p895_p5 = scmp.ne.s32.totalorder %s131_s29, %s894_s3  ;;  %s899_s5 = sshll.u32 %s991_s4, 4  ;;  %s900_s5 = int_to_ptr.vmem [resolvable:$false] %s899_s5 }
  0x19   : > { %s901_s12 = scalar_lea.vmem %s900_s5, 256  ;;  %p902_p10 = scmp.lt.s32.totalorder %s131_s29, %s900_s5 }
  0x1a   : > { %p897_p6 = pnand %p895_p5, %p883_p3  ;;  %p903_p12 = scmp.lt.s32.totalorder %s901_s12, %s894_s3 }
  0x1c   : > { %p898_p7 = pneg %p897_p6  ;;  %p904_p4 = por %p903_p12, %p902_p10 }
  0x1e   : > { %p905_p13 = pnand %p904_p4, %p898_p7 }
  0x20   : > { %908 = shalt.err (!%p905_p13)
}
  0x21   : > { %815 = dma.hbm_to_vmem [thread:$0]  (!%p1085_p0), %s128_s27, 128, %s131_s29, %s115_s2  }
  0x22   : > { %p136_p11 = pnand %p786_p1, %p135_p2 }
  0x23   : > { %s1100_s13 = sand.u32 (!%p136_p11), 1, %s973_s7  }
  0x24   : > { %139 = sbr.rel (%p136_p11) target bundleno = 337 (0x151), region = 24  ;;  %s787_s15 = sshll.u32 (!%p136_p11), %s1100_s13, 3 }
  0x25   : > { %s142_s16 = scalar_lea.sflag (!%p136_p11), [#allocation3], %s1100_s13  ;;  %s145_s17 = scalar_lea.vmem (!%p136_p11), [#allocation2], %s787_s15 }
  0x29   : > { %960 = dma.done.wait (%p1061_p8), %s142_s16, 128  }
  0x2a   : > { %962 = vsyncadd (%p1061_p8), %s142_s16, 4294967168  ;;  %v166_v0 = vld [vmem:[%s145_s17] sm:$0xff]  ;;  %s992_s22 = smov 80   ;;  %s993_s23 = smov 112   ;;  %v999_v1 = vmov 1983009808   ;;  %v209_v3 = vlaneseq }
  0x2b   : > { %178 = vrot.lane.b32.xlu1 %v166_v0, %s992_s22  ;;  %170 = vrot.lane.b32.xlu0 %v166_v0, %s993_s23  ;;  %s994_s24 = smov 64   ;;  %s995_s25 = smov 96   ;;  %v207_v2 = vunpack.c.l.s4 %v999_v1  ;;  %v1000_v6 = vmov 1934713408   ;;  %v168_v15 = vrot.slane %v166_v0, 4  ;;  %vm657_vm0 = vcmask 130048  }
  0x2c   : > { %s996_s26 = smov 32   ;;  %s997_s27 = smov 48   ;;  %v210_v5 = vshrl.u32 %v209_v3, 7  ;;  %v224_v7 = vunpack.c.l.s4 %v1000_v6  ;;  %vm660_vm1 = vcmask 261120   ;;  %vm663_vm2 = vcmask 392192  }
  0x2d   : > { %s998_s28 = smov 16   ;;  %v208_v4 = vunpack.c.0.s8 %v207_v2  ;;  %s788_s18 = sshll.u32 %s1100_s13, 4  ;;  %vm666_vm3 = vcmask 523264  }
  0x2e   : > { %v225_v14 = vunpack.c.0.s8 %v224_v7  ;;  %s163_s29 = scalar_lea.vmem [#allocation5], %s788_s18  ;;  %s807_s2 = sshll.u32 %s981_s9, 8 }
  0x2f   : > { %182 = vrot.lane.b32.xlu1 %v166_v0, %s994_s24  ;;  %174 = vrot.lane.b32.xlu0 %v166_v0, %s995_s25  ;;  %v1111_v12 = vsub.s32 %v208_v4, %v210_v5  ;;  %s686_s30 = sshll.u32 %s163_s29, 4  ;;  %s1176_s5 = scalar_lea.hbm %s1225_s1, %s807_s2  ;;  %s1171_s30 = int_to_ptr.vmem [resolvable:$true] %s686_s30 }
  0x30   : > { %v1114_v22 = vsub.s32 %v225_v14, %v210_v5  ;;  %s670_s9 = scalar_lea.sflag [#allocation4], %s1100_s13  ;;  %s909_s12 = scalar_lea.vmem %s1171_s30, 256 }
  0x31   : > { %p910_p8 = scmp.ne.s32.totalorder %s1171_s30, %s909_s12  ;;  %s1001_s15 = smov [#allocation5]  }
  0x32   : > { %s913_s16 = sshll.u32 %s1001_s15, 4  ;;  %s914_s16 = int_to_ptr.vmem [resolvable:$false] %s913_s16 }
  0x33   : > { %190 = vrot.lane.b32.xlu1 %v166_v0, %s996_s26  ;;  %186 = vrot.lane.b32.xlu0 %v166_v0, %s997_s27  ;;  %p911_p11 = pnand %p910_p8, %p1065_p9  ;;  %s915_s17 = scalar_lea.vmem %s914_s16, 512 }
  0x34   : > { %p916_p0 = scmp.lt.s32.totalorder %s1171_s30, %s914_s16  ;;  %p917_p1 = scmp.lt.s32.totalorder %s915_s17, %s909_s12 }
  0x35   : > { %p912_p12 = pneg %p911_p11 }
  0x36   : > { %p918_p2 = por %p917_p1, %p916_p0 }
  0x37   : > { %194 = vrot.lane.b32.xlu0 %v166_v0, %s998_s28 }
  0x38   : > { %p919_p3 = pnand %p918_p2, %p912_p12 }
  0x9d   : > { %v179_v8 = vpop.permute.xlu1 %178  ;;  %v171_v9 = vpop.permute.xlu0 %170 }
  0x9e   : > { %v180_v10 = vrot.slane %v179_v8, 4  ;;  %v172_v11 = vrot.slane %v171_v9, 4  ;;  %v213_v13 = vcombine.low %v171_v9, %v179_v8 }
  0xa0   : > { %v281_v18 = vcombine.low %v172_v11, %v180_v10  ;;  %v220_v21 = vrot.slane %v213_v13, %v1111_v12 }
  0xa1   : > { %v183_v16 = vpop.permute.xlu1 %182  ;;  %v175_v17 = vpop.permute.xlu0 %174 }
  0xa2   : > { %v176_v19 = vrot.slane %v175_v17, 4  ;;  %v205_v20 = vcombine.low %v166_v0, %v175_v17  ;;  %v288_v27 = vrot.slane %v281_v18, %v1111_v12  ;;  %v184_v31 = vrot.slane %v183_v16, 4 }
  0xa4   : > { %v212_v23 = vrot.slane %v205_v20, %v1111_v12  ;;  %v273_v24 = vcombine.low %v168_v15, %v176_v19 }
  0xa5   : > { %v191_v25 = vpop.permute.xlu1 %190  ;;  %v187_v26 = vpop.permute.xlu0 %186 }
  0xa6   : > { %v221_v28 = vcombine.low %v212_v23, %v220_v21  ;;  %v222_v29 = vcombine.high %v212_v23, %v220_v21  ;;  %v280_v30 = vrot.slane %v273_v24, %v1111_v12  ;;  %v192_v32 = vrot.slane %v191_v25, 4 }
  0xa7   : > { %v239_v37 = vcombine.low %v183_v16, %v191_v25  ;;  %v188_v44 = vrot.slane %v187_v26, 4 }
  0xa8   : > { %v229_v33 = vrot.slane %v221_v28, %v1114_v22  ;;  %v236_v34 = vrot.slane %v222_v29, %v1114_v22  ;;  %v289_v35 = vcombine.low %v280_v30, %v288_v27  ;;  %v290_v36 = vcombine.high %v280_v30, %v288_v27 }
  0xa9   : > { %v195_v38 = vpop.permute.xlu0 %194  ;;  %v307_v43 = vcombine.low %v184_v31, %v192_v32  ;;  %v246_v51 = vrot.slane %v239_v37, %v1111_v12 }
  0xaa   : > { %v297_v39 = vrot.slane %v289_v35, %v1114_v22  ;;  %v304_v40 = vrot.slane %v290_v36, %v1114_v22  ;;  %v341_v41 = vcombine.low %v229_v33, %v236_v34  ;;  %v789_v42 = vcombine.high %v229_v33, %v236_v34 }
  0xab   : > { %v196_v45 = vrot.slane %v195_v38, 4  ;;  %v247_v46 = vcombine.low %v187_v26, %v195_v38  ;;  %v314_v58 = vrot.slane %v307_v43, %v1111_v12 }
  0xac   : > { %v348_v47 = vrot.slane %v341_v41, %v1111_v12  ;;  %v356_v48 = vrot.slane %v789_v42, %v1111_v12  ;;  %v409_v49 = vcombine.low %v297_v39, %v304_v40  ;;  %v791_v50 = vcombine.high %v297_v39, %v304_v40 }
  0xad   : > { %v254_v52 = vrot.slane %v247_v46, %v1111_v12  ;;  %v315_v53 = vcombine.low %v188_v44, %v196_v45 }
  0xae   : > { %v357_v54 = vcombine.low %v348_v47, %v356_v48  ;;  %v358_v55 = vcombine.high %v348_v47, %v356_v48  ;;  %v416_v56 = vrot.slane %v409_v49, %v1111_v12  ;;  %v424_v57 = vrot.slane %v791_v50, %v1111_v12 }
  0xaf   : > { %v255_v59 = vcombine.low %v246_v51, %v254_v52  ;;  %v256_v60 = vcombine.high %v246_v51, %v254_v52  ;;  %v322_v61 = vrot.slane %v315_v53, %v1111_v12 }
  0xb0   : > { %v425_v62 = vcombine.low %v416_v56, %v424_v57  ;;  %v426_v63 = vcombine.high %v416_v56, %v424_v57  ;;  %v365_v0 = vrot.slane %v357_v54, %v1114_v22  ;;  %v372_v1 = vrot.slane %v358_v55, %v1114_v22 }
  0xb1   : > { %v263_v2 = vrot.slane %v255_v59, %v1114_v22  ;;  %v270_v3 = vrot.slane %v256_v60, %v1114_v22  ;;  %v323_v4 = vcombine.low %v314_v58, %v322_v61  ;;  %v324_v5 = vcombine.high %v314_v58, %v322_v61 }
  0xb2   : > { %v433_v6 = vrot.slane %v425_v62, %v1114_v22  ;;  %v440_v7 = vrot.slane %v426_v63, %v1114_v22  ;;  %v477_v13 = vcombine.low %v365_v0, %v372_v1  ;;  %v793_v14 = vcombine.high %v365_v0, %v372_v1 }
  0xb3   : > { %v331_v8 = vrot.slane %v323_v4, %v1114_v22  ;;  %v338_v9 = vrot.slane %v324_v5, %v1114_v22  ;;  %v375_v10 = vcombine.low %v263_v2, %v270_v3  ;;  %v790_v11 = vcombine.high %v263_v2, %v270_v3 }
  0xb4   : > { %v545_v19 = vcombine.low %v433_v6, %v440_v7  ;;  %v795_v20 = vcombine.high %v433_v6, %v440_v7  ;;  %v484_v26 = vrot.slane %v477_v13, %v1111_v12  ;;  %v492_v27 = vrot.slane %v793_v14, %v1111_v12 }
  0xb5   : > { %v382_v15 = vrot.slane %v375_v10, %v1111_v12  ;;  %v390_v16 = vrot.slane %v790_v11, %v1111_v12  ;;  %v443_v17 = vcombine.low %v331_v8, %v338_v9  ;;  %v792_v18 = vcombine.high %v331_v8, %v338_v9 }
  0xb6   : > { %v552_v32 = vrot.slane %v545_v19, %v1111_v12  ;;  %v560_v33 = vrot.slane %v795_v20, %v1111_v12  ;;  %v493_v38 = vcombine.low %v484_v26, %v492_v27  ;;  %v494_v48 = vcombine.high %v484_v26, %v492_v27 }
  0xb7   : > { %v391_v21 = vcombine.low %v382_v15, %v390_v16  ;;  %v392_v23 = vcombine.high %v382_v15, %v390_v16  ;;  %v450_v24 = vrot.slane %v443_v17, %v1111_v12  ;;  %v458_v25 = vrot.slane %v792_v18, %v1111_v12 }
  0xb8   : > { %v561_v43 = vcombine.low %v552_v32, %v560_v33  ;;  %v501_v49 = vrot.slane %v493_v38, %v1114_v22  ;;  %v562_v53 = vcombine.high %v552_v32, %v560_v33  ;;  %v508_v59 = vrot.slane %v494_v48, %v1114_v22 }
  0xb9   : > { %v459_v28 = vcombine.low %v450_v24, %v458_v25  ;;  %v460_v29 = vcombine.high %v450_v24, %v458_v25  ;;  %v399_v30 = vrot.slane %v391_v21, %v1114_v22  ;;  %v406_v31 = vrot.slane %v392_v23, %v1114_v22 }
  0xba   : > { %v569_v55 = vrot.slane %v561_v43, %v1114_v22  ;;  %v576_v63 = vrot.slane %v562_v53, %v1114_v22 }
  0xbb   : > { %v511_v34 = vcombine.low %v399_v30, %v406_v31  ;;  %v794_v35 = vcombine.high %v399_v30, %v406_v31  ;;  %v467_v36 = vrot.slane %v459_v28, %v1114_v22  ;;  %v474_v37 = vrot.slane %v460_v29, %v1114_v22 }
  0xbd   : > { %v518_v39 = vrot.slane %v511_v34, %v1111_v12  ;;  %v526_v40 = vrot.slane %v794_v35, %v1111_v12  ;;  %v579_v41 = vcombine.low %v467_v36, %v474_v37  ;;  %v796_v42 = vcombine.high %v467_v36, %v474_v37 }
  0xbf   : > { %v527_v44 = vcombine.low %v518_v39, %v526_v40  ;;  %v586_v45 = vrot.slane %v579_v41, %v1111_v12  ;;  %v594_v46 = vrot.slane %v796_v42, %v1111_v12  ;;  %v528_v47 = vcombine.high %v518_v39, %v526_v40 }
  0xc1   : > { %v535_v50 = vrot.slane %v527_v44, %v1114_v22  ;;  %v595_v51 = vcombine.low %v586_v45, %v594_v46  ;;  %v596_v52 = vcombine.high %v586_v45, %v594_v46  ;;  %v542_v57 = vrot.slane %v528_v47, %v1114_v22 }
  0xc3   : > { %v797_v54 = vcombine.high %v501_v49, %v535_v50  ;;  %v603_v56 = vrot.slane %v595_v51, %v1114_v22  ;;  %v617_v58 = vcombine.low %v501_v49, %v535_v50  ;;  %v610_v60 = vrot.slane %v596_v52, %v1114_v22 }
  0xc4   : > { %v637_v62 = vcombine.low %v508_v59, %v542_v57  ;;  %v799_v1 = vcombine.high %v508_v59, %v542_v57 }
  0xc5   : > { %627 = vrot.lane.b32.xlu1 %v797_v54, %s998_s28  ;;  %v798_v12 = vcombine.high %v569_v55, %v603_v56  ;;  %v618_v61 = vcombine.low %v569_v55, %v603_v56  ;;  %v638_v0 = vcombine.low %v576_v63, %v610_v60  ;;  %v800_v2 = vcombine.high %v576_v63, %v610_v60 }
  0xc7   : > { %629 = vrot.lane.b32.xlu0 %v798_v12, %s998_s28 }
  0xc9   : > { %639 = vrot.lane.b32.xlu1 %v637_v62, %s996_s26 }
  0xcb   : > { %641 = vrot.lane.b32.xlu0 %v638_v0, %s996_s26 }
  0xcd   : > { %651 = vrot.lane.b32.xlu1 %v799_v1, %s997_s27 }
  0xcf   : > { %653 = vrot.lane.b32.xlu0 %v800_v2, %s997_s27 }
 0x137   : > { %v628_v3 = vpop.permute.xlu1 %627 }
 0x138   : > { %v658_v6 = vsel %vm657_vm0, %v617_v58, %v628_v3 }
 0x139   : > { %v630_v4 = vpop.permute.xlu0 %629 }
 0x13a   : > { %v659_v9 = vsel %vm657_vm0, %v618_v61, %v630_v4 }
 0x13b   : > { %v640_v5 = vpop.permute.xlu1 %639 }
 0x13c   : > { %v661_v7 = vsel %vm660_vm1, %v658_v6, %v640_v5 }
 0x13d   : > { %v642_v22 = vpop.permute.xlu0 %641 }
 0x13e   : > { %v662_v11 = vsel %vm660_vm1, %v659_v9, %v642_v22 }
 0x13f   : > { %v652_v8 = vpop.permute.xlu1 %651 }
 0x140   : > { %v664_v10 = vsel %vm663_vm2, %v661_v7, %v652_v8 }
 0x141   : > { %667 = vst.msk [vmem:[%s163_s29] sm:$0xff] %vm666_vm3, %v664_v10  ;;  %v654_v13 = vpop.permute.xlu0 %653 }
 0x142   : > { %v665_v14 = vsel %vm663_vm2, %v662_v11, %v654_v13 }
 0x143   : > { %668 = vst.msk [vmem:[%s163_s29 + $0x8] sm:$0xff] %vm666_vm3, %v665_v14 }
 0x144   : > { %922 = shalt.err (!%p919_p3)
}
 0x145   : > { %s923_s22 = scalar_lea.hbm %s1176_s5, 256  ;;  %s927_s25 = scalar_lea.hbm %s1225_s1, 512 }
 0x146   : > { %p924_p5 = scmp.ne.s32.totalorder %s1176_s5, %s923_s22  ;;  %p928_p10 = scmp.lt.s32.totalorder %s1176_s5, %s1225_s1 }
 0x147   : > { %p929_p4 = scmp.lt.s32.totalorder %s927_s25, %s923_s22 }
 0x148   : > { %p925_p6 = pnand %p924_p5, %p1065_p9 }
 0x149   : > { %p930_p13 = por %p929_p4, %p928_p10 }
 0x14a   : > { %p926_p7 = pneg %p925_p6 }
 0x14c   : > { %p931_p8 = pnand %p930_p13, %p926_p7 }
 0x14e   : > { %934 = shalt.err (!%p931_p8)
}
 0x14f   : > { %s1002_s28 = smov 128   ;;  %s1003_s18 = smov 8  }
 0x150   : > { %810 = dma.vmem_to_hbm [thread:$0]  (%p1065_p9), %s1171_s30, 256, %s1176_s5, %s670_s9, %s1002_s28, %s1002_s28, %s1003_s18  }
 0x151 PF: > { %s701_s29 = sand.u32 1, %s969_s6   ;;  %p1231_p11 = scmp.ne.s32.totalorder %s1229_s21, 0 }
 0x152   : > { %p1232_p12 = scmp.ge.s32.totalorder %s989_s11, 2  ;;  %s702_s2 = scalar_lea.sflag [#allocation4], %s701_s29 }
 0x154   : > { %p817_p0 = pnand %p1232_p12, %p1231_p11 }
 0x156   : > { %p818_p1 = pneg %p817_p0 }
 0x158   : > { %964 = dma.done.wait (%p818_p1), %s702_s2, 256  }
 0x159   : > { %966 = vsyncadd (%p818_p1), %s702_s2, 4294967040  ;;  %s17_s11 = sadd.s32 1, %s989_s11   ;;  %s1233_s6 = smov %s973_s7 }
 0x15a   : > { %p14_p2 = scmp.ge.s32.totalorder %s17_s11, 4   ;;  %s1234_s7 = smov %s977_s8 }
 0x15b   : > { %s1235_s8 = smov %s1070_s20  ;;  %s1236_s9 = smov %s985_s10 }
 0x15c   : > { %s1237_s10 = smov %s1239_s14  ;;  %16 = sbr.rel (!%p14_p2) target bundleno = 6 (0x6), region = 69 }
 0x161   :  { %707 = vsyncpa [#allocation3], 1 }
 0x162   :  { %709 = vsyncpa [#allocation3 + $0x1], 1 }
 0x163   :  { %710 = vsyncpa [#allocation4], 1 }
 0x164   :  { %712 = vsyncpa [#allocation4 + $0x1], 1 }

// kernel: tpu_custom_call.1
= control target key start
LH: loop header
LB: loop body
LE: loop exit
PB: predicated region body
PF: predicated region fallthrough
CT: control target
= control target key end

     0   :  { %6 = vsyncpa [#allocation3], 0  ;;  %s822_s0 = inlined_call_operand.hbm [shape: f32[2,4,16,16], index: 0, kind: input, shape index: {}]   ;;  %s823_s1 = inlined_call_operand.hbm [shape: f32[2,16,4,16], index: 1, kind: output, shape index: {}]  }
   0x1   :  { %8 = vsyncpa [#allocation3 + $0x1], 0 }
   0x2   :  { %9 = vsyncpa [#allocation4], 0 }
   0x3   :  { %11 = vsyncpa [#allocation4 + $0x1], 0  ;;  %s656_s6 = smov 0   ;;  %s658_s7 = smov 0  }
   0x4   :  { %s660_s8 = smov 0   ;;  %s662_s9 = smov 0  }
   0x5   :  { %s664_s10 = smov 0   ;;  %s666_s11 = smov 0  }
   0x6 LB: > { %s441_s12 = sadd.s32 4294967295, %s635_s11   ;;  %s442_s13 = sadd.s32 4294967294, %s635_s11   ;;  %s635_s11 = sphi %s666_s11, %s17_s11   ;;  %s631_s10 = sphi %s664_s10, %s834_s10   ;;  %s627_s9 = sphi %s662_s9, %s833_s9   ;;  %s623_s8 = sphi %s660_s8, %s832_s8   ;;  %s619_s7 = sphi %s658_s7, %s831_s7   ;;  %s615_s6 = sphi %s656_s6, %s830_s6  }
   0x7   : > { %s36_s14 = sadd.s32 1, %s631_s10  ;;  %s47_s15 = sadd.s32 1, %s623_s8 }
   0x8   : > { %p38_p0 = scmp.ge.s32.totalorder %s36_s14, 2  ;;  %p54_p1 = scmp.ne.s32.totalorder %s623_s8, %s619_s7 }
   0x9   : > { %p55_p2 = scmp.eq.s32.totalorder %s635_s11, 0  ;;  %p60_p3 = scmp.ne.s32.totalorder %s619_s7, %s615_s6 }
   0xa   : > { %s836_s14 = smov (%p38_p0, %s36_s14), 0  ;;  %p61_p5 = scmp.eq.s32.totalorder %s441_s12, 0 }
   0xb   : > { %p697_p4 = por %p55_p2, %p54_p1  ;;  %s40_s17 = ssub.s32 %s631_s10, %s836_s14 }
   0xc   : > { %p88_p6 = scmp.eq.s32.totalorder %s441_s12, 1  ;;  %p45_p7 = scmp.eq.s32.totalorder %s40_s17, 0 }
   0xd   : > { %p703_p8 = por %p61_p5, %p60_p3  ;;  %p94_p10 = scmp.eq.s32.totalorder %s442_s13, 1 }
   0xe   : > { %p707_p9 = por %p88_p6, %p54_p1  ;;  %p470_p13 = scmp.lt.s32.totalorder %s635_s11, 2 }
   0xf   : > { %s712_s20 = scalar_select %p45_p7, %s623_s8, %s47_s15  }
  0x10   : > { %p714_p11 = por %p94_p10, %p60_p3  ;;  %s114_s22 = sand.u32 1, %s623_s8  }
  0x11   : > { %s445_s23 = sshll.u32 %s114_s22, 6  ;;  %s456_s24 = sshll.u32 %s631_s10, 10 }
  0x12   : > { %s129_s27 = scalar_lea.hbm %s822_s0, %s456_s24  ;;  %s118_s28 = scalar_lea.vmem [#allocation2], %s445_s23 }
  0x13   : > { %s130_s29 = sshll.u32 %s118_s28, 4  ;;  %p727_p0 = pnand %p470_p13, %p697_p4  ;;  %s131_s29 = int_to_ptr.vmem [resolvable:$true] %s130_s29 }
  0x14   : > { %p448_p1 = scmp.ge.s32.totalorder %s635_s11, 1  ;;  %s115_s2 = scalar_lea.sflag [#allocation3], %s114_s22 }
  0x15   : > { %p529_p2 = pneg %p727_p0  ;;  %s540_s3 = scalar_lea.vmem %s131_s29, 1024 }
  0x16   : > { %p541_p3 = scmp.ne.s32.totalorder %s131_s29, %s540_s3  ;;  %s637_s4 = smov [#allocation2]  }
  0x17   : > { %s545_s5 = sshll.u32 %s637_s4, 4  ;;  %s546_s5 = int_to_ptr.vmem [resolvable:$false] %s545_s5 }
  0x18   : > { %p543_p5 = pnand %p541_p3, %p529_p2  ;;  %s547_s12 = scalar_lea.vmem %s546_s5, 2048 }
  0x19   : > { %p548_p7 = scmp.lt.s32.totalorder %s131_s29, %s546_s5  ;;  %p549_p10 = scmp.lt.s32.totalorder %s547_s12, %s540_s3 }
  0x1a   : > { %p544_p6 = pneg %p543_p5 }
  0x1b   : > { %p550_p12 = por %p549_p10, %p548_p7 }
  0x1d   : > { %p551_p4 = pnand %p550_p12, %p544_p6 }
  0x1f   : > { %554 = shalt.err (!%p551_p4)
}
  0x20   : > { %s638_s13 = smov 128   ;;  %s639_s15 = smov 8  }
  0x21   : > { %465 = dma.hbm_to_vmem [thread:$0]  (!%p727_p0), %s129_s27, 1024, %s131_s29, %s115_s2, %s638_s13, %s638_s13, %s639_s15  }
  0x22   : > { %p138_p13 = scmp.lt.s32.totalorder %s635_s11, 3 }
  0x24   : > { %p139_p2 = pnand %p448_p1, %p138_p13 }
  0x25   : > { %s740_s16 = sand.u32 (!%p139_p2), 1, %s619_s7  }
  0x26   : > { %142 = sbr.rel (%p139_p2) target bundleno = 78 (0x4e), region = 24  ;;  %s449_s17 = sshll.u32 (!%p139_p2), %s740_s16, 6 }
  0x27   : > { %s145_s22 = scalar_lea.sflag (!%p139_p2), [#allocation3], %s740_s16  ;;  %s148_s23 = scalar_lea.vmem (!%p139_p2), [#allocation2], %s449_s17 }
  0x2b   : > { %606 = dma.done.wait (%p703_p8), %s145_s22, 1024  }
  0x2c   : > { %608 = vsyncadd (%p703_p8), %s145_s22, 4294966272  ;;  %v183_v0 = vlaneseq  ;;  %v640_v1 = vmov 1983009808   ;;  %v641_v3 = vmov 1934713408   ;;  %v170_v9 = vld [vmem:[%s148_s23] sm:$0xff] }
  0x2d   : > { %v181_v2 = vunpack.c.l.s4 %v640_v1  ;;  %v213_v4 = vunpack.c.l.s4 %v641_v3  ;;  %v172_v10 = vld [vmem:[%s148_s23 + $0x10] sm:$0xff]  ;;  %v174_v11 = vld [vmem:[%s148_s23 + $0x20] sm:$0xff]  ;;  %v171_v15 = vld [vmem:[%s148_s23 + $0x8] sm:$0xff]  ;;  %vm314_vm0 = vcmask 125952   ;;  %s457_s18 = sshll.u32 %s627_s9, 10  ;;  %s166_s24 = scalar_lea.vmem [#allocation5], %s449_s17 }
  0x2e   : > { %v184_v5 = vshrl.u32 %v183_v0, 7  ;;  %v176_v12 = vld [vmem:[%s148_s23 + $0x30] sm:$0xff]  ;;  %v178_v13 = vcombine.low %v170_v9, %v174_v11  ;;  %v179_v14 = vcombine.high %v170_v9, %v174_v11  ;;  %v173_v16 = vld [vmem:[%s148_s23 + $0x18] sm:$0xff]  ;;  %v175_v20 = vld [vmem:[%s148_s23 + $0x28] sm:$0xff]  ;;  %s348_s25 = sshll.u32 %s166_s24, 4  ;;  %v642_v48 = vmov 0.0   ;;  %s766_s27 = scalar_lea.hbm %s823_s1, %s457_s18  ;;  %s768_s25 = int_to_ptr.vmem [resolvable:$true] %s348_s25 }
  0x2f   : > { %v182_v6 = vunpack.c.0.s8 %v181_v2  ;;  %v214_v7 = vunpack.c.0.s8 %v213_v4  ;;  %v194_v17 = vcombine.low %v172_v10, %v176_v12  ;;  %v195_v19 = vcombine.high %v172_v10, %v176_v12  ;;  %v177_v21 = vld [vmem:[%s148_s23 + $0x38] sm:$0xff]  ;;  %s332_s28 = scalar_lea.sflag [#allocation4], %s740_s16  ;;  %s555_s29 = scalar_lea.vmem %s768_s25, 1024 }
  0x30   : > { %v246_v24 = vcombine.low %v171_v15, %v175_v20  ;;  %v262_v25 = vcombine.low %v173_v16, %v177_v21  ;;  %v247_v28 = vcombine.high %v171_v15, %v175_v20  ;;  %v263_v29 = vcombine.high %v173_v16, %v177_v21  ;;  %p556_p8 = scmp.ne.s32.totalorder %s768_s25, %s555_s29  ;;  %s643_s30 = smov [#allocation5]  }
  0x31   : > { %v185_v8 = vsub.s32 %v182_v6, %v184_v5  ;;  %v217_v18 = vsub.s32 %v214_v7, %v184_v5  ;;  %s559_s2 = sshll.u32 %s643_s30, 4  ;;  %s560_s2 = int_to_ptr.vmem [resolvable:$false] %s559_s2 }
  0x32   : > { %p557_p12 = pnand %p556_p8, %p707_p9  ;;  %s561_s3 = scalar_lea.vmem %s560_s2, 2048 }
  0x33   : > { %v186_v22 = vrot.slane %v178_v13, %v185_v8  ;;  %v193_v23 = vrot.slane %v179_v14, %v185_v8  ;;  %v202_v26 = vrot.slane %v194_v17, %v185_v8  ;;  %v209_v27 = vrot.slane %v195_v19, %v185_v8  ;;  %p562_p1 = scmp.lt.s32.totalorder %s768_s25, %s560_s2  ;;  %p563_p3 = scmp.lt.s32.totalorder %s561_s3, %s555_s29 }
  0x34   : > { %v254_v30 = vrot.slane %v246_v24, %v185_v8  ;;  %v270_v31 = vrot.slane %v262_v25, %v185_v8  ;;  %v261_v38 = vrot.slane %v247_v28, %v185_v8  ;;  %v277_v39 = vrot.slane %v263_v29, %v185_v8  ;;  %p558_p0 = pneg %p557_p12 }
  0x35   : > { %v210_v32 = vcombine.low %v186_v22, %v202_v26  ;;  %v211_v33 = vcombine.high %v186_v22, %v202_v26  ;;  %v226_v34 = vcombine.low %v193_v23, %v209_v27  ;;  %v227_v35 = vcombine.high %v193_v23, %v209_v27  ;;  %p564_p5 = por %p563_p3, %p562_p1 }
  0x36   : > { %v278_v36 = vcombine.low %v254_v30, %v270_v31  ;;  %v279_v37 = vcombine.high %v254_v30, %v270_v31  ;;  %v294_v46 = vcombine.low %v261_v38, %v277_v39  ;;  %v295_v47 = vcombine.high %v261_v38, %v277_v39 }
  0x37   : > { %v218_v40 = vrot.slane %v210_v32, %v217_v18  ;;  %v225_v41 = vrot.slane %v211_v33, %v217_v18  ;;  %v234_v42 = vrot.slane %v226_v34, %v217_v18  ;;  %v241_v43 = vrot.slane %v227_v35, %v217_v18  ;;  %p565_p6 = pnand %p564_p5, %p558_p0 }
  0x38   : > { %v286_v44 = vrot.slane %v278_v36, %v217_v18  ;;  %v293_v45 = vrot.slane %v279_v37, %v217_v18  ;;  %v302_v55 = vrot.slane %v294_v46, %v217_v18  ;;  %v309_v56 = vrot.slane %v295_v47, %v217_v18 }
  0x39   : > { %315 = vst.msk [vmem:[%s166_s24] sm:$0xf] %vm314_vm0, %v218_v40  ;;  %v242_v49 = vcombine.high %v218_v40, %v642_v48  ;;  %317 = vst.msk [vmem:[%s166_s24 + $0x8] sm:$0xf] %vm314_vm0, %v225_v41  ;;  %v243_v50 = vcombine.high %v225_v41, %v642_v48  ;;  %v244_v51 = vcombine.high %v234_v42, %v642_v48 }
  0x3a   : > { %319 = vst.msk [vmem:[%s166_s24 + $0x10] sm:$0xf] %vm314_vm0, %v234_v42  ;;  %321 = vst.msk [vmem:[%s166_s24 + $0x18] sm:$0xf] %vm314_vm0, %v241_v43  ;;  %v245_v52 = vcombine.high %v241_v43, %v642_v48  ;;  %v310_v53 = vcombine.high %v286_v44, %v642_v48  ;;  %v311_v54 = vcombine.high %v293_v45, %v642_v48 }
  0x3b   : > { %323 = vst.msk [vmem:[%s166_s24 + $0x20] sm:$0xf] %vm314_vm0, %v286_v44  ;;  %325 = vst.msk [vmem:[%s166_s24 + $0x28] sm:$0xf] %vm314_vm0, %v293_v45  ;;  %v312_v57 = vcombine.high %v302_v55, %v642_v48  ;;  %v313_v58 = vcombine.high %v309_v56, %v642_v48 }
  0x3c   : > { %316 = vst.msk [vmem:[%s166_s24 + $0x4] sm:$0xf] %vm314_vm0, %v242_v49  ;;  %318 = vst.msk [vmem:[%s166_s24 + $0xc] sm:$0xf] %vm314_vm0, %v243_v50 }
  0x3d   : > { %320 = vst.msk [vmem:[%s166_s24 + $0x14] sm:$0xf] %vm314_vm0, %v244_v51  ;;  %322 = vst.msk [vmem:[%s166_s24 + $0x1c] sm:$0xf] %vm314_vm0, %v245_v52 }
  0x3e   : > { %324 = vst.msk [vmem:[%s166_s24 + $0x24] sm:$0xf] %vm314_vm0, %v310_v53  ;;  %326 = vst.msk [vmem:[%s166_s24 + $0x2c] sm:$0xf] %vm314_vm0, %v311_v54 }
  0x3f   : > { %327 = vst.msk [vmem:[%s166_s24 + $0x30] sm:$0xf] %vm314_vm0, %v302_v55  ;;  %329 = vst.msk [vmem:[%s166_s24 + $0x38] sm:$0xf] %vm314_vm0, %v309_v56 }
  0x40   : > { %328 = vst.msk [vmem:[%s166_s24 + $0x34] sm:$0xf] %vm314_vm0, %v312_v57  ;;  %330 = vst.msk [vmem:[%s166_s24 + $0x3c] sm:$0xf] %vm314_vm0, %v313_v58 }
  0x41   : > { %568 = shalt.err (!%p565_p6)
}
  0x42   : > { %s569_s4 = scalar_lea.hbm %s766_s27, 1024  ;;  %s573_s13 = scalar_lea.hbm %s823_s1, 2048 }
  0x43   : > { %p570_p7 = scmp.ne.s32.totalorder %s766_s27, %s569_s4  ;;  %p574_p13 = scmp.lt.s32.totalorder %s766_s27, %s823_s1 }
  0x44   : > { %p575_p2 = scmp.lt.s32.totalorder %s573_s13, %s569_s4 }
  0x45   : > { %p571_p10 = pnand %p570_p7, %p707_p9 }
  0x46   : > { %p576_p8 = por %p575_p2, %p574_p13 }
  0x47   : > { %p572_p4 = pneg %p571_p10 }
  0x49   : > { %p577_p12 = pnand %p576_p8, %p572_p4 }
  0x4b   : > { %580 = shalt.err (!%p577_p12)
}
  0x4c   : > { %s644_s22 = smov 64   ;;  %s645_s23 = smov 4  }
  0x4d   : > { %460 = dma.vmem_to_hbm [thread:$0]  (%p707_p9), %s768_s25, 1024, %s766_s27, %s332_s28, %s644_s22, %s644_s22, %s645_s23  }
  0x4e PF: > { %s363_s18 = sand.u32 1, %s615_s6   ;;  %p829_p0 = scmp.ge.s32.totalorder %s635_s11, 2 }
  0x4f   : > { %s364_s24 = scalar_lea.sflag [#allocation4], %s363_s18 }
  0x50   : > { %p467_p1 = pnand %p829_p0, %p714_p11 }
  0x52   : > { %p468_p3 = pneg %p467_p1 }
  0x54   : > { %610 = dma.done.wait (%p468_p3), %s364_s24, 1024  }
  0x55   : > { %612 = vsyncadd (%p468_p3), %s364_s24, 4294966272  ;;  %s17_s11 = sadd.s32 1, %s635_s11   ;;  %s830_s6 = smov %s619_s7 }
  0x56   : > { %p14_p5 = scmp.ge.s32.totalorder %s17_s11, 4   ;;  %s831_s7 = smov %s623_s8 }
  0x57   : > { %s832_s8 = smov %s712_s20  ;;  %s833_s9 = smov %s631_s10 }
  0x58   : > { %s834_s10 = smov %s836_s14  ;;  %16 = sbr.rel (!%p14_p5) target bundleno = 6 (0x6), region = 69 }
  0x5d   :  { %369 = vsyncpa [#allocation3], 1 }
  0x5e   :  { %371 = vsyncpa [#allocation3 + $0x1], 1 }
  0x5f   :  { %372 = vsyncpa [#allocation4], 1 }
  0x60   :  { %374 = vsyncpa [#allocation4 + $0x1], 1 }

</bundles_post_ra>
